<compile_context>
chip_gen: v5e
topology: v5e:2x2
jax: 0.10.0
libtpu: 0.0.40
codegen_flags: <defaults>
</compile_context>

<pallas_src>
import jax
import jax.numpy as jnp
from jax import lax
from jax.experimental import pallas as pl
from jax.experimental.pallas import tpu as pltpu

SELU_ALPHA = 1.6732632423543772
SELU_SCALE = 1.0507009873554805
BN_EPS = 1e-5
LANE = 128                       # feature-axis padding target (vreg lane width)
SUBLANE = 8
VMEM_LIMIT = 48 * 1024 * 1024    # safe on v5e/v6e (128 MiB phys) and v7x (64 MiB phys)

_VMEM = pl.BlockSpec(memory_space=pltpu.MemorySpace.VMEM)
_SMALL_PARAMS = pltpu.CompilerParams(vmem_limit_bytes=VMEM_LIMIT)


def _selu(x):
    # Overflow-safe SELU: exp() only ever sees x <= 0.
    return SELU_SCALE * (jnp.maximum(x, 0.0)
                         + SELU_ALPHA * (jnp.exp(jnp.minimum(x, 0.0)) - 1.0))


# ----------------------------------------------------------------------------
# Tiled propagation kernel: Z = A_hat @ M   (bf16 in, f32 accumulate)
# ----------------------------------------------------------------------------
def _propagate_kernel(a_ref, m_ref, z_ref, acc_ref):
    @pl.when(pl.program_id(1) == 0)
    def _():
        acc_ref[...] = jnp.zeros_like(acc_ref)

    acc_ref[...] += jnp.dot(a_ref[...], m_ref[...],
                            preferred_element_type=jnp.float32)

    @pl.when(pl.program_id(1) == pl.num_programs(1) - 1)
    def _():
        z_ref[...] = acc_ref[...]


def _choose_tile(n_pad):
    for t in (512, 256, 128):
        if n_pad % t == 0:
            return t
    return n_pad


def propagate(a_bf16, m_bf16):
    """Tiled Z = A @ M on the MXU; A is (N_pad, N_pad) bf16, M is (N_pad, 128) bf16."""
    n_pad = a_bf16.shape[0]
    f_pad = m_bf16.shape[1]
    tile = _choose_tile(n_pad)
    grid = (n_pad // tile, n_pad // tile)
    flops = 2 * n_pad * n_pad * f_pad
    bytes_accessed = a_bf16.size * 2 + m_bf16.size * 2 + n_pad * f_pad * 4
    return pl.pallas_call(
        _propagate_kernel,
        out_shape=jax.ShapeDtypeStruct((n_pad, f_pad), jnp.float32),
        grid_spec=pltpu.PrefetchScalarGridSpec(
            num_scalar_prefetch=0,
            grid=grid,
            in_specs=[
                pl.BlockSpec((tile, tile), lambda i, k: (i, k)),   # A row/col tile
                pl.BlockSpec((tile, f_pad), lambda i, k: (k, 0)),  # M K-tile
            ],
            out_specs=pl.BlockSpec((tile, f_pad), lambda i, k: (i, 0)),
            scratch_shapes=[pltpu.VMEM((tile, f_pad), jnp.float32)],
        ),
        compiler_params=pltpu.CompilerParams(
            dimension_semantics=("parallel", "arbitrary"),
            vmem_limit_bytes=VMEM_LIMIT),
        cost_estimate=pl.CostEstimate(
            flops=flops, transcendentals=0, bytes_accessed=bytes_accessed),
    )(a_bf16, m_bf16)


# ----------------------------------------------------------------------------
# Small single-block kernels (O(N*128) work; trivially VMEM-resident)
# TODO(synk): for N beyond ~32K nodes these head kernels would need row tiling
# with a two-pass (stats then normalize) BatchNorm.
# ----------------------------------------------------------------------------
def _proj_kernel(x_ref, w_ref, p_ref):
    # layer-1 input projection: P1 = X @ W1  (bf16 MXU inputs, f32 accumulate)
    p_ref[...] = jnp.dot(x_ref[...], w_ref[...],
                         preferred_element_type=jnp.float32).astype(jnp.bfloat16)


def _make_head_kernel(n_real):
    """bias + SELU + training-mode BatchNorm1d + projection by next layer weight."""
    inv_n = 1.0 / float(n_real)

    def head_kernel(z_ref, b_ref, g_ref, be_ref, wn_ref, p_ref):
        z = z_ref[...]                                   # (N_pad, 128) f32
        act = _selu(z + b_ref[...])
        rows = lax.broadcasted_iota(jnp.int32, (z.shape[0], 1), 0)
        mask = (rows < n_real).astype(jnp.float32)       # exclude padded nodes
        mu = jnp.sum(act * mask, axis=0, keepdims=True) * inv_n
        diff = (act - mu) * mask
        var = jnp.sum(diff * diff, axis=0, keepdims=True) * inv_n
        hn = (g_ref[...] * (act - mu) * lax.rsqrt(var + BN_EPS)
              + be_ref[...]) * mask
        p_ref[...] = jnp.dot(hn.astype(jnp.bfloat16), wn_ref[...],
                             preferred_element_type=jnp.float32).astype(jnp.bfloat16)

    return head_kernel


def _final_kernel(z_ref, b_ref, pool_ref, fw1_ref, fb1_ref, fw2_ref, fb2_ref,
                  out_ref):
    h3 = jnp.maximum(z_ref[...] + b_ref[...], 0.0)                       # ReLU
    hg = jnp.dot(pool_ref[...], h3, preferred_element_type=jnp.float32)  # add-pool
    h = _selu(jnp.dot(hg, fw1_ref[...], preferred_element_type=jnp.float32)
              + fb1_ref[...])
    out_ref[...] = (jnp.dot(h, fw2_ref[...], preferred_element_type=jnp.float32)
                    + fb2_ref[...])


def _call(kernel, out_shape, *args):
    return pl.pallas_call(
        kernel,
        out_shape=out_shape,
        in_specs=[_VMEM] * len(args),
        out_specs=_VMEM,
        compiler_params=_SMALL_PARAMS,
    )(*args)


# ----------------------------------------------------------------------------
# Forward pass
# ----------------------------------------------------------------------------
def _round_up(n, m):
    return ((n + m - 1) // m) * m


def _pad2d(a, rows, cols):
    r, c = a.shape
    return jnp.pad(a, ((0, rows - r), (0, cols - c)))


def gcn_forward(a_hat, x, params, pool):
    n = x.shape[0]
    num_graphs = pool.shape[0]
    dim_out = params["fw2"].shape[1]

    n_pad = _round_up(n, LANE)
    b_pad = _round_up(max(num_graphs, SUBLANE), SUBLANE)

    # zero-padded, lane-dense operands; bf16 for the heavy MXU inputs
    a_p = _pad2d(a_hat, n_pad, n_pad).astype(jnp.bfloat16)
    x_p = _pad2d(x, n_pad, LANE).astype(jnp.bfloat16)
    pool_p = _pad2d(pool, b_pad, n_pad).astype(jnp.float32)

    def wpad(name, dtype=jnp.float32):
        return _pad2d(params[name], LANE, LANE).astype(dtype)

    def vpad(name):
        return _pad2d(params[name], 1, LANE).astype(jnp.float32)

    w1 = wpad("w1", jnp.bfloat16)
    w2 = wpad("w2", jnp.bfloat16)
    w3 = wpad("w3", jnp.bfloat16)
    b1, b2, b3 = vpad("b1"), vpad("b2"), vpad("b3")
    g1, be1 = vpad("g1"), vpad("be1")
    g2, be2 = vpad("g2"), vpad("be2")
    fw1, fb1 = wpad("fw1"), vpad("fb1")
    fw2, fb2 = wpad("fw2"), vpad("fb2")

    head = _make_head_kernel(n)
    bf_nodes = jax.ShapeDtypeStruct((n_pad, LANE), jnp.bfloat16)

    # layer 1:  h1 = BN1(SELU(A @ (X W1) + b1))
    p1 = _call(_proj_kernel, bf_nodes, x_p, w1)
    z1 = propagate(a_p, p1)
    # head fuses layer-1 tail with layer-2 projection: p2 = h1 @ W2
    p2 = _call(head, bf_nodes, z1, b1, g1, be1, w2)
    # layer 2:  h2 = BN2(SELU(A @ (h1 W2) + b2)); p3 = h2 @ W3
    z2 = propagate(a_p, p2)
    p3 = _call(head, bf_nodes, z2, b2, g2, be2, w3)
    # layer 3 + pooling + MLP head
    z3 = propagate(a_p, p3)
    out_pad = _call(_final_kernel,
                    jax.ShapeDtypeStruct((b_pad, LANE), jnp.float32),
                    z3, b3, pool_p, fw1, fb1, fw2, fb2)
    return out_pad[:num_graphs, :dim_out]


# ----------------------------------------------------------------------------
# Plain-JAX graph preprocessing & parameter init
# ----------------------------------------------------------------------------
def build_normalized_adjacency(edge_index, num_nodes):
    """Dense D^-1/2 (A + I) D^-1/2 from a (2, E) edge_index (plain-JAX glue)."""
    src, dst = edge_index[0], edge_index[1]
    adj = jnp.zeros((num_nodes, num_nodes), jnp.float32)
    adj = adj.at[dst, src].set(1.0)                      # message src -> dst
    adj = adj + jnp.eye(num_nodes, dtype=jnp.float32)    # add self loops
    deg = jnp.sum(adj, axis=1)
    dinv = jnp.where(deg > 0, lax.rsqrt(deg), 0.0)
    return adj * dinv[:, None] * dinv[None, :]


def build_pool_matrix(batch, num_graphs):
    """(num_graphs, N) one-hot matrix so P @ H == global_add_pool(H, batch)."""
    return (batch[None, :] == jnp.arange(num_graphs)[:, None]).astype(jnp.float32)


def init_params(key, num_node_feats, d_hidden, d_emb, dim_out):
    ks = jax.random.split(key, 10)

    def lin(k, fan_in, fan_out):
        bound = 1.0 / jnp.sqrt(fan_in)
        kw, kb = jax.random.split(k)
        w = jax.random.uniform(kw, (fan_in, fan_out), jnp.float32, -bound, bound)
        b = jax.random.uniform(kb, (1, fan_out), jnp.float32, -bound, bound)
        return w, b

    w1, b1 = lin(ks[0], num_node_feats, d_hidden)
    w2, b2 = lin(ks[1], d_hidden, d_hidden)
    w3, b3 = lin(ks[2], d_hidden, d_hidden)
    fw1, fb1 = lin(ks[3], d_hidden, d_emb)
    fw2, fb2 = lin(ks[4], d_emb, dim_out)
    return {
        "w1": w1, "b1": b1,
        "g1": jnp.ones((1, d_hidden), jnp.float32),
        "be1": jnp.zeros((1, d_hidden), jnp.float32),
        "w2": w2, "b2": b2,
        "g2": jnp.ones((1, d_hidden), jnp.float32),
        "be2": jnp.zeros((1, d_hidden), jnp.float32),
        "w3": w3, "b3": b3,
        "fw1": fw1, "fb1": fb1,
        "fw2": fw2, "fb2": fb2,
    }


if __name__ == "__main__":
    # 8 ring graphs of 32 nodes each -> N = 256 nodes (two 128-tiles per grid axis,
    # so the tiled propagation kernel exercises both the row and the K axis).
    num_node_feats, d_hidden, d_emb, dim_out = 8, 32, 16, 4
    nodes_per_graph, num_graphs = 32, 8
    N = nodes_per_graph * num_graphs

    key = jax.random.PRNGKey(0)
    k_x, k_p = jax.random.split(key)

    x = jax.random.normal(k_x, (N, num_node_feats), jnp.float32)

    # ring edges (bidirectional) inside each graph
    src, dst = [], []
    for g in range(num_graphs):
        off = g * nodes_per_graph
        for i in range(nodes_per_graph):
            j = (i + 1) % nodes_per_graph
            src += [off + i, off + j]
            dst += [off + j, off + i]
    edge_index = jnp.array([src, dst], dtype=jnp.int32)
    batch = jnp.repeat(jnp.arange(num_graphs, dtype=jnp.int32), nodes_per_graph)

    a_hat = build_normalized_adjacency(edge_index, N)
    pool = build_pool_matrix(batch, num_graphs)
    params = init_params(k_p, num_node_feats, d_hidden, d_emb, dim_out)

    out = gcn_forward(a_hat, x, params, pool)
    out = jax.block_until_ready(out)
    assert out.shape == (num_graphs, dim_out)
    assert bool(jnp.all(jnp.isfinite(out)))
    print("KERNEL_OK")
</pallas_src>

<mosaic_0001>
module attributes {stable_mosaic.version = 11 : i64} {
  func.func @_proj_kernel(%arg0: memref<256x128xbf16, #tpu.memory_space<vmem>>, %arg1: memref<128x128xbf16, #tpu.memory_space<vmem>>, %arg2: memref<256x128xbf16, #tpu.memory_space<vmem>>) attributes {dimension_semantics = [], scalar_prefetch = 0 : i64, scratch_operands = 0 : i64, tpu.core_type = #tpu.core_type<tc>} {
    %c0 = arith.constant 0 : index
    %c0_0 = arith.constant 0 : index
    %0 = vector.load %arg0[%c0, %c0_0] : memref<256x128xbf16, #tpu.memory_space<vmem>>, vector<256x128xbf16>
    %c0_1 = arith.constant 0 : index
    %c0_2 = arith.constant 0 : index
    %1 = vector.load %arg1[%c0_1, %c0_2] : memref<128x128xbf16, #tpu.memory_space<vmem>>, vector<128x128xbf16>
    %cst = arith.constant dense<0.000000e+00> : vector<256x128xf32>
    %2 = tpu.matmul %0, %1, %cst {dimension_numbers = #tpu.dot_dimension_numbers<[1], [0], [0], [1], [0, 0, 1, 1], [], []>} : vector<256x128xbf16>, vector<128x128xbf16>, vector<256x128xf32> -> vector<256x128xf32>
    %3 = arith.truncf %2 : vector<256x128xf32> to vector<256x128xbf16>
    %c0_3 = arith.constant 0 : index
    %c0_4 = arith.constant 0 : index
    %4 = vector.load %arg2[%c0_3, %c0_4] : memref<256x128xbf16, #tpu.memory_space<vmem>>, vector<256x128xbf16>
    tpu.vector_store %arg2[%c0_3, %c0_4], %3 {strides = array<i32>} : memref<256x128xbf16, #tpu.memory_space<vmem>>, vector<256x128xbf16>,
    return
  }
}

</mosaic_0001>

<bundles_post_ra>
// kernel: tpu_custom_call.1
= control target key start
LH: loop header
LB: loop body
LE: loop exit
PB: predicated region body
PF: predicated region fallthrough
CT: control target
= control target key end

     0   :  { %7 = vsyncpa [#allocation3], 0  ;;  %s769_s0 = inlined_call_operand.hbm [shape: bf16[256,128], index: 0, kind: input, shape index: {}]   ;;  %s770_s1 = inlined_call_operand.hbm [shape: bf16[128,128], index: 1, kind: input, shape index: {}]   ;;  %s771_s2 = inlined_call_operand.hbm [shape: bf16[256,128], index: 2, kind: output, shape index: {}]  }
   0x1   :  { %8 = vsyncpa [#allocation6], 0 }
   0x2   :  { %9 = vsyncpa [#allocation4], 0  ;;  %s14_s11 = sshll.u32 %s769_s0, 4  ;;  %s731_s12 = smov [#allocation2]   ;;  %s15_s11 = int_to_ptr.hbm [resolvable:$true] %s14_s11 }
   0x3   :  { %s16_s13 = sshll.u32 %s731_s12, 4  ;;  %s27_s16 = sshll.u32 %s770_s1, 4  ;;  %s17_s13 = int_to_ptr.vmem [resolvable:$true] %s16_s13  ;;  %s28_s16 = int_to_ptr.hbm [resolvable:$true] %s27_s16 }
   0x4   :  { %s732_s17 = smov 64   ;;  %s733_s18 = smov 4  }
   0x5   :  { %22 = dma.hbm_to_vmem [thread:$0]  %s15_s11, 2048, %s17_s13, [#allocation3], %s732_s17, %s732_s17, %s733_s18  }
   0x6   :  { %s734_s19 = smov [#allocation5]  }
   0x7   :  { %s29_s20 = sshll.u32 %s734_s19, 4  ;;  %s30_s20 = int_to_ptr.vmem [resolvable:$true] %s29_s20 }
   0x8   :  { %35 = dma.hbm_to_vmem [thread:$0]  %s28_s16, 1024, %s30_s20, [#allocation6], %s732_s17, %s732_s17, %s733_s18  }
   0x9   :  { %725 = dma.done.wait [#allocation3], 2048  }
   0xa   :  { %726 = vsyncadd [#allocation3], 4294965248 }
   0xb   :  { %727 = dma.done.wait [#allocation6], 1024  }
   0xc   :  { %728 = vsyncadd [#allocation6], 4294966272  ;;  %v528_v0 = vld [vmem:[#allocation5 + $0x38] sm:$0xff]  ;;  %v527_v1 = vld [vmem:[#allocation5 + $0x30] sm:$0xff]  ;;  %s735_s0 = smov [#allocation7]   ;;  %s395_s23 = sshll.u32 %s771_s2, 4  ;;  %s396_s23 = int_to_ptr.hbm [resolvable:$true] %s395_s23 }
   0xd   :  { %236 = vmatpush.bf16.msra.mxu0 %v528_v0  ;;  %624 = vmatpush.bf16.msra.mxu1 %v528_v0  ;;  %v526_v2 = vld [vmem:[#allocation5 + $0x28] sm:$0xff]  ;;  %v525_v3 = vld [vmem:[#allocation5 + $0x20] sm:$0xff]  ;;  %v524_v4 = vld [vmem:[#allocation5 + $0x18] sm:$0xff]  ;;  %s393_s1 = sshll.u32 %s735_s0, 4  ;;  %s394_s1 = int_to_ptr.vmem [resolvable:$true] %s393_s1 }
   0xe   :  { %625 = vmatpush.bf16.msra.mxu2 %v528_v0  ;;  %626 = vmatpush.bf16.msra.mxu3 %v528_v0  ;;  %v523_v5 = vld [vmem:[#allocation5 + $0x10] sm:$0xff]  ;;  %v522_v6 = vld [vmem:[#allocation5 + $0x8] sm:$0xff]  ;;  %v521_v7 = vld [vmem:[#allocation5] sm:$0xff] }
   0xf   :  { %v505_v8 = vld [vmem:[#allocation2] sm:$0xff]  ;;  %v506_v12 = vld [vmem:[#allocation2 + $0x8] sm:$0xff]  ;;  %v507_v16 = vld [vmem:[#allocation2 + $0x10] sm:$0xff] }
  0x10   :  { %v509_v9 = vld [vmem:[#allocation2 + $0x20] sm:$0xff]  ;;  %v510_v13 = vld [vmem:[#allocation2 + $0x28] sm:$0xff]  ;;  %v511_v17 = vld [vmem:[#allocation2 + $0x30] sm:$0xff] }
  0x11   :  { %237 = vmatpush.bf16.msra.mxu0 %v527_v1  ;;  %627 = vmatpush.bf16.msra.mxu1 %v527_v1  ;;  %v513_v10 = vld [vmem:[#allocation2 + $0x40] sm:$0xff]  ;;  %v514_v14 = vld [vmem:[#allocation2 + $0x48] sm:$0xff]  ;;  %v515_v18 = vld [vmem:[#allocation2 + $0x50] sm:$0xff] }
  0x12   :  { %628 = vmatpush.bf16.msra.mxu2 %v527_v1  ;;  %629 = vmatpush.bf16.msra.mxu3 %v527_v1  ;;  %v517_v11 = vld [vmem:[#allocation2 + $0x60] sm:$0xff]  ;;  %v518_v15 = vld [vmem:[#allocation2 + $0x68] sm:$0xff]  ;;  %v519_v19 = vld [vmem:[#allocation2 + $0x70] sm:$0xff] }
  0x13   :  { %v508_v20 = vld [vmem:[#allocation2 + $0x18] sm:$0xff] }
  0x14   :  { %v512_v21 = vld [vmem:[#allocation2 + $0x38] sm:$0xff] }
  0x15   :  { %238 = vmatpush.bf16.msra.mxu0 %v526_v2  ;;  %630 = vmatpush.bf16.msra.mxu1 %v526_v2  ;;  %v516_v22 = vld [vmem:[#allocation2 + $0x58] sm:$0xff] }
  0x16   :  { %631 = vmatpush.bf16.msra.mxu2 %v526_v2  ;;  %632 = vmatpush.bf16.msra.mxu3 %v526_v2  ;;  %v520_v23 = vld [vmem:[#allocation2 + $0x78] sm:$0xff] }
  0x19   :  { %239 = vmatpush.bf16.msra.mxu0 %v525_v3  ;;  %633 = vmatpush.bf16.msra.mxu1 %v525_v3 }
  0x1a   :  { %634 = vmatpush.bf16.msra.mxu2 %v525_v3  ;;  %635 = vmatpush.bf16.msra.mxu3 %v525_v3 }
  0x1d   :  { %240 = vmatpush.bf16.msra.mxu0 %v524_v4  ;;  %636 = vmatpush.bf16.msra.mxu1 %v524_v4 }
  0x1e   :  { %637 = vmatpush.bf16.msra.mxu2 %v524_v4  ;;  %638 = vmatpush.bf16.msra.mxu3 %v524_v4 }
  0x21   :  { %241 = vmatpush.bf16.msra.mxu0 %v523_v5  ;;  %639 = vmatpush.bf16.msra.mxu1 %v523_v5 }
  0x22   :  { %640 = vmatpush.bf16.msra.mxu2 %v523_v5  ;;  %641 = vmatpush.bf16.msra.mxu3 %v523_v5 }
  0x25   :  { %242 = vmatpush.bf16.msra.mxu0 %v522_v6  ;;  %642 = vmatpush.bf16.msra.mxu1 %v522_v6 }
  0x26   :  { %643 = vmatpush.bf16.msra.mxu2 %v522_v6  ;;  %644 = vmatpush.bf16.msra.mxu3 %v522_v6 }
  0x29   :  { %243 = vmatpush.bf16.msra.mxu0 %v521_v7  ;;  %645 = vmatpush.bf16.msra.mxu1 %v521_v7 }
  0x2a   :  { %646 = vmatpush.bf16.msra.mxu2 %v521_v7  ;;  %647 = vmatpush.bf16.msra.mxu3 %v521_v7 }
  0x2c   :  { %244 = vmatmul.bf16.vlgmr.msra.gmra.mxu0 %v505_v8  ;;  %264 = vmatmul.bf16.vlgmr.msra.gmra.mxu1 %v509_v9 }
  0x2d   :  { %284 = vmatmul.bf16.vlgmr.msra.gmra.mxu2 %v513_v10  ;;  %304 = vmatmul.bf16.vlgmr.msra.gmra.mxu3 %v517_v11 }
  0x3c   :  { %249 = vmatmul.bf16.gmra.mxu0 %v506_v12  ;;  %269 = vmatmul.bf16.gmra.mxu1 %v510_v13 }
  0x3d   :  { %289 = vmatmul.bf16.gmra.mxu2 %v514_v14  ;;  %309 = vmatmul.bf16.gmra.mxu3 %v518_v15 }
  0x4c   :  { %254 = vmatmul.bf16.gmra.mxu0 %v507_v16  ;;  %274 = vmatmul.bf16.gmra.mxu1 %v511_v17 }
  0x4d   :  { %294 = vmatmul.bf16.gmra.mxu2 %v515_v18  ;;  %314 = vmatmul.bf16.gmra.mxu3 %v519_v19 }
  0x5c   :  { %259 = vmatmul.bf16.gmra.mxu0 %v508_v20  ;;  %279 = vmatmul.bf16.gmra.mxu1 %v512_v21 }
  0x5d   :  { %299 = vmatmul.bf16.gmra.mxu2 %v516_v22  ;;  %319 = vmatmul.bf16.gmra.mxu3 %v520_v23 }
  0xa9   :  { %v245_v24 = vpop.f32.mrf.mxu0  ;;  %v265_v25 = vpop.f32.mrf.mxu1 }
  0xb0   :  { %v285_v26 = vpop.f32.mrf.mxu2  ;;  %v305_v27 = vpop.f32.mrf.mxu3 }
  0xb1   :  { %v247_v28 = vpop.f32.mrf.mxu0  ;;  %v267_v29 = vpop.f32.mrf.mxu1 }
  0xb2   :  { %v532_v30 = vpack.c.bf16 %v247_v28, %v245_v24  ;;  %v552_v31 = vpack.c.bf16 %v267_v29, %v265_v25 }
  0xb4   :  { %533 = vst [vmem:[#allocation7] sm:$0xff] %v532_v30  }
  0xb5   :  { %612 = vst [vmem:[#allocation7 + $0x20] sm:$0xff] %v552_v31  }
  0xb8   :  { %v287_v32 = vpop.f32.mrf.mxu2  ;;  %v307_v33 = vpop.f32.mrf.mxu3 }
  0xb9   :  { %v572_v34 = vpack.c.bf16 %v287_v32, %v285_v26  ;;  %v592_v35 = vpack.c.bf16 %v307_v33, %v305_v27  ;;  %v250_v36 = vpop.f32.mrf.mxu0  ;;  %v270_v37 = vpop.f32.mrf.mxu1 }
  0xbb   :  { %616 = vst [vmem:[#allocation7 + $0x40] sm:$0xff] %v572_v34  }
  0xbc   :  { %620 = vst [vmem:[#allocation7 + $0x60] sm:$0xff] %v592_v35  }
  0xc0   :  { %v290_v38 = vpop.f32.mrf.mxu2  ;;  %v310_v39 = vpop.f32.mrf.mxu3 }
  0xc1   :  { %v252_v40 = vpop.f32.mrf.mxu0  ;;  %v272_v41 = vpop.f32.mrf.mxu1 }
  0xc2   :  { %v537_v42 = vpack.c.bf16 %v252_v40, %v250_v36  ;;  %v557_v43 = vpack.c.bf16 %v272_v41, %v270_v37 }
  0xc4   :  { %609 = vst [vmem:[#allocation7 + $0x8] sm:$0xff] %v537_v42  }
  0xc5   :  { %613 = vst [vmem:[#allocation7 + $0x28] sm:$0xff] %v557_v43  }
  0xc8   :  { %v292_v44 = vpop.f32.mrf.mxu2  ;;  %v312_v45 = vpop.f32.mrf.mxu3 }
  0xc9   :  { %v577_v46 = vpack.c.bf16 %v292_v44, %v290_v38  ;;  %v597_v47 = vpack.c.bf16 %v312_v45, %v310_v39  ;;  %v255_v48 = vpop.f32.mrf.mxu0  ;;  %v275_v49 = vpop.f32.mrf.mxu1 }
  0xcb   :  { %617 = vst [vmem:[#allocation7 + $0x48] sm:$0xff] %v577_v46  }
  0xcc   :  { %621 = vst [vmem:[#allocation7 + $0x68] sm:$0xff] %v597_v47  }
  0xd0   :  { %v295_v50 = vpop.f32.mrf.mxu2  ;;  %v315_v51 = vpop.f32.mrf.mxu3 }
  0xd1   :  { %v257_v52 = vpop.f32.mrf.mxu0  ;;  %v277_v53 = vpop.f32.mrf.mxu1 }
  0xd2   :  { %v542_v54 = vpack.c.bf16 %v257_v52, %v255_v48  ;;  %v562_v55 = vpack.c.bf16 %v277_v53, %v275_v49 }
  0xd4   :  { %610 = vst [vmem:[#allocation7 + $0x10] sm:$0xff] %v542_v54  }
  0xd5   :  { %614 = vst [vmem:[#allocation7 + $0x30] sm:$0xff] %v562_v55  }
  0xd8   :  { %v297_v56 = vpop.f32.mrf.mxu2  ;;  %v317_v57 = vpop.f32.mrf.mxu3 }
  0xd9   :  { %v582_v58 = vpack.c.bf16 %v297_v56, %v295_v50  ;;  %v602_v59 = vpack.c.bf16 %v317_v57, %v315_v51  ;;  %v260_v60 = vpop.f32.mrf.mxu0  ;;  %v280_v61 = vpop.f32.mrf.mxu1 }
  0xdb   :  { %618 = vst [vmem:[#allocation7 + $0x50] sm:$0xff] %v582_v58  }
  0xdc   :  { %622 = vst [vmem:[#allocation7 + $0x70] sm:$0xff] %v602_v59  }
  0xe0   :  { %v300_v62 = vpop.f32.mrf.mxu2  ;;  %v320_v63 = vpop.f32.mrf.mxu3 }
  0xe1   :  { %v262_v0 = vpop.f32.mrf.mxu0  ;;  %v282_v1 = vpop.f32.mrf.mxu1 }
  0xe2   :  { %v547_v2 = vpack.c.bf16 %v262_v0, %v260_v60  ;;  %v567_v3 = vpack.c.bf16 %v282_v1, %v280_v61 }
  0xe4   :  { %611 = vst [vmem:[#allocation7 + $0x18] sm:$0xff] %v547_v2  }
  0xe5   :  { %615 = vst [vmem:[#allocation7 + $0x38] sm:$0xff] %v567_v3  }
  0xe8   :  { %v302_v4 = vpop.f32.mrf.mxu2  ;;  %v322_v5 = vpop.f32.mrf.mxu3 }
  0xe9   :  { %v587_v6 = vpack.c.bf16 %v302_v4, %v300_v62  ;;  %v607_v7 = vpack.c.bf16 %v322_v5, %v320_v63 }
  0xeb   :  { %619 = vst [vmem:[#allocation7 + $0x58] sm:$0xff] %v587_v6  }
  0xec   :  { %623 = vst [vmem:[#allocation7 + $0x78] sm:$0xff] %v607_v7  }
  0xed   :  { %401 = dma.vmem_to_hbm [thread:$0]  %s394_s1, 2048, %s396_s23, [#allocation4], %s732_s17, %s732_s17, %s733_s18  }
  0xee   :  { %729 = dma.done.wait [#allocation4], 2048  }
  0xef   :  { %730 = vsyncadd [#allocation4], 4294965248 }
  0xf0   :  { %406 = vsyncpa [#allocation3], 1 }
  0xf1   :  { %407 = vsyncpa [#allocation6], 1 }
  0xf2   :  { %408 = vsyncpa [#allocation4], 1 }

</bundles_post_ra>
